<compile_context>
chip_gen: v5e
topology: v5e:2x2
jax: 0.10.0
libtpu: 0.0.40
codegen_flags: <defaults>
</compile_context>

<pallas_src>
import functools

import jax
import jax.numpy as jnp
from jax.experimental import pallas as pl
from jax.experimental.pallas import tpu as pltpu


def _round_up(x, m):
    return (x + m - 1) // m * m


def _mm(x, w_ref):
    # Canonical (M,K)x(K,N) matmul; operand dtype follows the (possibly bf16) weight, f32 acc.
    w = w_ref[...]
    return jnp.dot(x.astype(w.dtype), w, preferred_element_type=jnp.float32)


def mixture_hnn_kernel(z_ref,
                       w1t_ref, b1_ref, w2t_ref, b2_ref, w3_ref, w1_ref, w2_ref,
                       f1t_ref, fb1_ref, f2t_ref, fb2_ref, f3t_ref, fb3_ref,
                       out_ref, *, d):
    z = z_ref[...]                      # (TN, D) f32
    q = z[:, :d]                        # static slices (no extra HBM traffic)
    p = z[:, d:]

    # ---- potential_net forward:  h2 = tanh(W2 tanh(W1 q + b1) + b2) ----
    h1 = jnp.tanh(_mm(q, w1t_ref) + b1_ref[...])            # (TN, h)
    h2 = jnp.tanh(_mm(h1, w2t_ref) + b2_ref[...])           # (TN, h)

    # ---- analytic dV/dq (reverse-mode through the tanh MLP; b3 does not affect the grad) ----
    g2 = (1.0 - h2 * h2) * w3_ref[...]                       # (TN, h); w3 is (1, h)
    g1 = (1.0 - h1 * h1) * _mm(g2, w2_ref)                   # (TN, h); W2 is (h, h)
    dVdq = _mm(g1, w1_ref)                                   # (TN, d); W1 is (h, d)

    # ---- force_net forward on the full (identity-normalized) input z ----
    a1 = jnp.tanh(_mm(z, f1t_ref) + fb1_ref[...])            # (TN, h)
    a2 = jnp.tanh(_mm(a1, f2t_ref) + fb2_ref[...])           # (TN, h)
    force = _mm(a2, f3t_ref) + fb3_ref[...]                  # (TN, d)

    # ---- Hamiltonian dynamics (Minv == I): single lane-denser output block ----
    out_ref[:, :d] = p.astype(out_ref.dtype)                 # dq/dt = p
    out_ref[:, d:] = (-dVdq + force).astype(out_ref.dtype)   # dp/dt = -dV/dq + force


def mixture_hnn_forward(z, params, *, tile_n=4096, use_bf16_matmul=False):
    """z: (N, D) with D == input_size == output_size.  Returns dz/dt: (N, D)."""
    N, D = z.shape
    d = D // 2
    h = params["W1"].shape[0]

    assert tile_n % 8 == 0
    TN = min(_round_up(N, 8), tile_n)          # sublane-aligned batch tile
    N_pad = _round_up(N, TN)
    if N_pad != N:
        z = jnp.pad(z, ((0, N_pad - N), (0, 0)))
    grid = (N_pad // TN,)

    W1, W2 = params["W1"], params["W2"]
    mm_dtype = jnp.bfloat16 if use_bf16_matmul else jnp.float32

    def mmw(w):                                # weights feeding matmuls (may be narrowed)
        return w.astype(mm_dtype)

    weights = (
        mmw(W1.T), params["b1"],               # W1^T (d,h), b1 (1,h)
        mmw(W2.T), params["b2"],               # W2^T (h,h), b2 (1,h)
        params["w3"],                          # w3  (1,h)  (elementwise, keep f32)
        mmw(W1), mmw(W2),                      # untransposed, for the backward matmuls
        mmw(params["F1"].T), params["fb1"],    # F1^T (D,h), fb1 (1,h)
        mmw(params["F2"].T), params["fb2"],    # F2^T (h,h), fb2 (1,h)
        mmw(params["F3"].T), params["fb3"],    # F3^T (h,d), fb3 (1,d)
    )

    z_spec = pl.BlockSpec((TN, D), lambda i: (i, 0))
    out_spec = pl.BlockSpec((TN, D), lambda i: (i, 0))
    # Full-block, grid-invariant specs: weights/biases are DMA'd once and stay VMEM-resident.
    w_specs = [pl.BlockSpec(w.shape, lambda i: (0, 0)) for w in weights]

    weight_bytes = int(sum(w.size * w.dtype.itemsize for w in weights))
    flops = int(2 * N_pad * (3 * h * h + 3 * h * d + D * h))
    transcendentals = int(4 * N_pad * h)
    bytes_accessed = int(2 * N_pad * D * 4 + weight_bytes)

    # VMEM budget: double-buffered in/out blocks + resident weights + f32 intermediates.
    vmem_est = 4 * (2 * TN * D * 4) + weight_bytes + 10 * TN * h * 4
    vmem_limit = int(min(max(2 * vmem_est, 16 << 20), 60 << 20))   # stays under v7x's 64 MiB

    out = pl.pallas_call(
        functools.partial(mixture_hnn_kernel, d=d),
        out_shape=jax.ShapeDtypeStruct((N_pad, D), jnp.float32),
        grid_spec=pltpu.PrefetchScalarGridSpec(
            num_scalar_prefetch=0,
            grid=grid,
            in_specs=[z_spec] + w_specs,
            out_specs=out_spec,
        ),
        compiler_params=pltpu.CompilerParams(
            dimension_semantics=("parallel",),      # batch axis -> megacore shard on v7x
            vmem_limit_bytes=vmem_limit,
        ),
        cost_estimate=pl.CostEstimate(
            flops=flops,
            transcendentals=transcendentals,
            bytes_accessed=bytes_accessed,
        ),
    )(z, *weights)

    return out[:N] if N_pad != N else out


def init_params(key, input_size, output_size, hidden_size):
    d = output_size // 2
    ks = jax.random.split(key, 12)

    def w(k, shape):
        return (0.1 * jax.random.normal(k, shape)).astype(jnp.float32)

    return {
        # potential_net: Linear(d->h), tanh, Linear(h->h), tanh, Linear(h->1)
        "W1": w(ks[0], (hidden_size, d)),           "b1": w(ks[1], (1, hidden_size)),
        "W2": w(ks[2], (hidden_size, hidden_size)), "b2": w(ks[3], (1, hidden_size)),
        "w3": w(ks[4], (1, hidden_size)),           # final bias b3 does not affect dV/dq
        # force_net: Linear(D->h), tanh, Linear(h->h), tanh, Linear(h->d)
        "F1": w(ks[5], (hidden_size, input_size)),  "fb1": w(ks[6], (1, hidden_size)),
        "F2": w(ks[7], (hidden_size, hidden_size)), "fb2": w(ks[8], (1, hidden_size)),
        "F3": w(ks[9], (d, hidden_size)),           "fb3": w(ks[10], (1, d)),
    }


def reference_forward(z, params):
    """Pure-JAX reference replicating the PyTorch forward (uses autodiff for dV/dq)."""
    D = z.shape[-1]
    d = D // 2
    q, p = z[:, :d], z[:, d:]

    def V_sum(qq):
        h1 = jnp.tanh(qq @ params["W1"].T + params["b1"])
        h2 = jnp.tanh(h1 @ params["W2"].T + params["b2"])
        return jnp.sum(h2 @ params["w3"].T)

    dVdq = jax.grad(V_sum)(q)
    a1 = jnp.tanh(z @ params["F1"].T + params["fb1"])
    a2 = jnp.tanh(a1 @ params["F2"].T + params["fb2"])
    force = a2 @ params["F3"].T + params["fb3"]
    return jnp.concatenate([p, -dVdq + force], axis=-1)


if __name__ == "__main__":
    # Small shapes: input_size == output_size == 8 (no control input), hidden = 32, batch = 8.
    input_size = 8
    output_size = 8
    hidden_size = 32
    N = 8

    key = jax.random.PRNGKey(0)
    k_z, k_p = jax.random.split(key)
    z = jax.random.normal(k_z, (N, output_size), dtype=jnp.float32)
    params = init_params(k_p, input_size, output_size, hidden_size)

    dz_dt = jax.block_until_ready(mixture_hnn_forward(z, params))

    ref = jax.block_until_ready(reference_forward(z, params))
    if not jnp.allclose(dz_dt, ref, atol=1e-5, rtol=1e-5):
        raise AssertionError("Pallas kernel does not match reference forward")

    print("KERNEL_OK")
</pallas_src>

<mosaic_0001>
module attributes {stable_mosaic.version = 11 : i64} {
  func.func @mixture_hnn_kernel(%arg0: i32, %arg1: memref<8x8xf32, #tpu.memory_space<vmem>>, %arg2: memref<4x32xf32, #tpu.memory_space<vmem>>, %arg3: memref<1x32xf32, #tpu.memory_space<vmem>>, %arg4: memref<32x32xf32, #tpu.memory_space<vmem>>, %arg5: memref<1x32xf32, #tpu.memory_space<vmem>>, %arg6: memref<1x32xf32, #tpu.memory_space<vmem>>, %arg7: memref<32x4xf32, #tpu.memory_space<vmem>>, %arg8: memref<32x32xf32, #tpu.memory_space<vmem>>, %arg9: memref<8x32xf32, #tpu.memory_space<vmem>>, %arg10: memref<1x32xf32, #tpu.memory_space<vmem>>, %arg11: memref<32x32xf32, #tpu.memory_space<vmem>>, %arg12: memref<1x32xf32, #tpu.memory_space<vmem>>, %arg13: memref<32x4xf32, #tpu.memory_space<vmem>>, %arg14: memref<1x4xf32, #tpu.memory_space<vmem>>, %arg15: memref<8x8xf32, #tpu.memory_space<vmem>>) attributes {dimension_semantics = [#tpu.dimension_semantics<parallel>], iteration_bounds = array<i64: 1>, scalar_prefetch = 0 : i64, scratch_operands = 0 : i64, tpu.core_type = #tpu.core_type<tc>, window_params = [{transform_indices = @transform_0, window_bounds = array<i64: 8, 8>}, {pipeline_mode = #tpu.pipeline_mode<synchronous>, transform_indices = @transform_1, window_bounds = array<i64: 4, 32>}, {pipeline_mode = #tpu.pipeline_mode<synchronous>, transform_indices = @transform_2, window_bounds = array<i64: 1, 32>}, {pipeline_mode = #tpu.pipeline_mode<synchronous>, transform_indices = @transform_3, window_bounds = array<i64: 32, 32>}, {pipeline_mode = #tpu.pipeline_mode<synchronous>, transform_indices = @transform_4, window_bounds = array<i64: 1, 32>}, {pipeline_mode = #tpu.pipeline_mode<synchronous>, transform_indices = @transform_5, window_bounds = array<i64: 1, 32>}, {pipeline_mode = #tpu.pipeline_mode<synchronous>, transform_indices = @transform_6, window_bounds = array<i64: 32, 4>}, {pipeline_mode = #tpu.pipeline_mode<synchronous>, transform_indices = @transform_7, window_bounds = array<i64: 32, 32>}, {pipeline_mode = #tpu.pipeline_mode<synchronous>, transform_indices = @transform_8, window_bounds = array<i64: 8, 32>}, {pipeline_mode = #tpu.pipeline_mode<synchronous>, transform_indices = @transform_9, window_bounds = array<i64: 1, 32>}, {pipeline_mode = #tpu.pipeline_mode<synchronous>, transform_indices = @transform_10, window_bounds = array<i64: 32, 32>}, {pipeline_mode = #tpu.pipeline_mode<synchronous>, transform_indices = @transform_11, window_bounds = array<i64: 1, 32>}, {pipeline_mode = #tpu.pipeline_mode<synchronous>, transform_indices = @transform_12, window_bounds = array<i64: 32, 4>}, {pipeline_mode = #tpu.pipeline_mode<synchronous>, transform_indices = @transform_13, window_bounds = array<i64: 1, 4>}, {transform_indices = @transform_14, window_bounds = array<i64: 8, 8>}]} {
    %c0 = arith.constant 0 : index
    %c0_0 = arith.constant 0 : index
    %0 = vector.load %arg1[%c0, %c0_0] : memref<8x8xf32, #tpu.memory_space<vmem>>, vector<8x8xf32>
    %1 = vector.extract_strided_slice %0 {offsets = [0, 0], sizes = [8, 4], strides = [1, 1]} : vector<8x8xf32> to vector<8x4xf32>
    %2 = vector.extract_strided_slice %0 {offsets = [0, 4], sizes = [8, 4], strides = [1, 1]} : vector<8x8xf32> to vector<8x4xf32>
    %c0_1 = arith.constant 0 : index
    %c0_2 = arith.constant 0 : index
    %3 = vector.load %arg2[%c0_1, %c0_2] : memref<4x32xf32, #tpu.memory_space<vmem>>, vector<4x32xf32>
    %cst = arith.constant dense<0.000000e+00> : vector<8x32xf32>
    %4 = tpu.matmul %1, %3, %cst {dimension_numbers = #tpu.dot_dimension_numbers<[1], [0], [0], [1], [0, 0, 1, 1], [], []>} : vector<8x4xf32>, vector<4x32xf32>, vector<8x32xf32> -> vector<8x32xf32>
    %c0_3 = arith.constant 0 : index
    %c0_4 = arith.constant 0 : index
    %5 = vector.load %arg3[%c0_3, %c0_4] : memref<1x32xf32, #tpu.memory_space<vmem>>, vector<1x32xf32>
    %6 = vector.broadcast %5 : vector<1x32xf32> to vector<8x32xf32>
    %7 = arith.addf %4, %6 : vector<8x32xf32>
    %8 = math.tanh %7 : vector<8x32xf32>
    %c0_5 = arith.constant 0 : index
    %c0_6 = arith.constant 0 : index
    %9 = vector.load %arg4[%c0_5, %c0_6] : memref<32x32xf32, #tpu.memory_space<vmem>>, vector<32x32xf32>
    %cst_7 = arith.constant dense<0.000000e+00> : vector<8x32xf32>
    %10 = tpu.matmul %8, %9, %cst_7 {dimension_numbers = #tpu.dot_dimension_numbers<[1], [0], [0], [1], [0, 0, 1, 1], [], []>} : vector<8x32xf32>, vector<32x32xf32>, vector<8x32xf32> -> vector<8x32xf32>
    %c0_8 = arith.constant 0 : index
    %c0_9 = arith.constant 0 : index
    %11 = vector.load %arg5[%c0_8, %c0_9] : memref<1x32xf32, #tpu.memory_space<vmem>>, vector<1x32xf32>
    %12 = vector.broadcast %11 : vector<1x32xf32> to vector<8x32xf32>
    %13 = arith.addf %10, %12 : vector<8x32xf32>
    %14 = math.tanh %13 : vector<8x32xf32>
    %15 = arith.mulf %14, %14 : vector<8x32xf32>
    %cst_10 = arith.constant 1.000000e+00 : f32
    %16 = vector.broadcast %cst_10 : f32 to vector<8x32xf32>
    %17 = arith.subf %16, %15 : vector<8x32xf32>
    %c0_11 = arith.constant 0 : index
    %c0_12 = arith.constant 0 : index
    %18 = vector.load %arg6[%c0_11, %c0_12] : memref<1x32xf32, #tpu.memory_space<vmem>>, vector<1x32xf32>
    %19 = vector.broadcast %18 : vector<1x32xf32> to vector<8x32xf32>
    %20 = arith.mulf %17, %19 : vector<8x32xf32>
    %21 = arith.mulf %8, %8 : vector<8x32xf32>
    %cst_13 = arith.constant 1.000000e+00 : f32
    %22 = vector.broadcast %cst_13 : f32 to vector<8x32xf32>
    %23 = arith.subf %22, %21 : vector<8x32xf32>
    %c0_14 = arith.constant 0 : index
    %c0_15 = arith.constant 0 : index
    %24 = vector.load %arg8[%c0_14, %c0_15] : memref<32x32xf32, #tpu.memory_space<vmem>>, vector<32x32xf32>
    %cst_16 = arith.constant dense<0.000000e+00> : vector<8x32xf32>
    %25 = tpu.matmul %20, %24, %cst_16 {dimension_numbers = #tpu.dot_dimension_numbers<[1], [0], [0], [1], [0, 0, 1, 1], [], []>} : vector<8x32xf32>, vector<32x32xf32>, vector<8x32xf32> -> vector<8x32xf32>
    %26 = arith.mulf %23, %25 : vector<8x32xf32>
    %c0_17 = arith.constant 0 : index
    %c0_18 = arith.constant 0 : index
    %27 = vector.load %arg7[%c0_17, %c0_18] : memref<32x4xf32, #tpu.memory_space<vmem>>, vector<32x4xf32>
    %cst_19 = arith.constant dense<0.000000e+00> : vector<8x4xf32>
    %28 = tpu.matmul %26, %27, %cst_19 {dimension_numbers = #tpu.dot_dimension_numbers<[1], [0], [0], [1], [0, 0, 1, 1], [], []>} : vector<8x32xf32>, vector<32x4xf32>, vector<8x4xf32> -> vector<8x4xf32>
    %c0_20 = arith.constant 0 : index
    %c0_21 = arith.constant 0 : index
    %29 = vector.load %arg9[%c0_20, %c0_21] : memref<8x32xf32, #tpu.memory_space<vmem>>, vector<8x32xf32>
    %cst_22 = arith.constant dense<0.000000e+00> : vector<8x32xf32>
    %30 = tpu.matmul %0, %29, %cst_22 {dimension_numbers = #tpu.dot_dimension_numbers<[1], [0], [0], [1], [0, 0, 1, 1], [], []>} : vector<8x8xf32>, vector<8x32xf32>, vector<8x32xf32> -> vector<8x32xf32>
    %c0_23 = arith.constant 0 : index
    %c0_24 = arith.constant 0 : index
    %31 = vector.load %arg10[%c0_23, %c0_24] : memref<1x32xf32, #tpu.memory_space<vmem>>, vector<1x32xf32>
    %32 = vector.broadcast %31 : vector<1x32xf32> to vector<8x32xf32>
    %33 = arith.addf %30, %32 : vector<8x32xf32>
    %34 = math.tanh %33 : vector<8x32xf32>
    %c0_25 = arith.constant 0 : index
    %c0_26 = arith.constant 0 : index
    %35 = vector.load %arg11[%c0_25, %c0_26] : memref<32x32xf32, #tpu.memory_space<vmem>>, vector<32x32xf32>
    %cst_27 = arith.constant dense<0.000000e+00> : vector<8x32xf32>
    %36 = tpu.matmul %34, %35, %cst_27 {dimension_numbers = #tpu.dot_dimension_numbers<[1], [0], [0], [1], [0, 0, 1, 1], [], []>} : vector<8x32xf32>, vector<32x32xf32>, vector<8x32xf32> -> vector<8x32xf32>
    %c0_28 = arith.constant 0 : index
    %c0_29 = arith.constant 0 : index
    %37 = vector.load %arg12[%c0_28, %c0_29] : memref<1x32xf32, #tpu.memory_space<vmem>>, vector<1x32xf32>
    %38 = vector.broadcast %37 : vector<1x32xf32> to vector<8x32xf32>
    %39 = arith.addf %36, %38 : vector<8x32xf32>
    %40 = math.tanh %39 : vector<8x32xf32>
    %c0_30 = arith.constant 0 : index
    %c0_31 = arith.constant 0 : index
    %41 = vector.load %arg13[%c0_30, %c0_31] : memref<32x4xf32, #tpu.memory_space<vmem>>, vector<32x4xf32>
    %cst_32 = arith.constant dense<0.000000e+00> : vector<8x4xf32>
    %42 = tpu.matmul %40, %41, %cst_32 {dimension_numbers = #tpu.dot_dimension_numbers<[1], [0], [0], [1], [0, 0, 1, 1], [], []>} : vector<8x32xf32>, vector<32x4xf32>, vector<8x4xf32> -> vector<8x4xf32>
    %c0_33 = arith.constant 0 : index
    %c0_34 = arith.constant 0 : index
    %43 = vector.load %arg14[%c0_33, %c0_34] : memref<1x4xf32, #tpu.memory_space<vmem>>, vector<1x4xf32>
    %44 = vector.broadcast %43 : vector<1x4xf32> to vector<8x4xf32>
    %45 = arith.addf %42, %44 : vector<8x4xf32>
    %c0_35 = arith.constant 0 : index
    %c0_36 = arith.constant 0 : index
    %46 = vector.load %arg15[%c0_35, %c0_36] : memref<8x8xf32, #tpu.memory_space<vmem>>, vector<8x4xf32>
    tpu.vector_store %arg15[%c0_35, %c0_36], %2 {strides = array<i32>} : memref<8x8xf32, #tpu.memory_space<vmem>>, vector<8x4xf32>,
    %cst_37 = arith.constant 0.000000e+00 : f32
    %47 = vector.broadcast %cst_37 : f32 to vector<8x4xf32>
    %48 = arith.subf %47, %28 : vector<8x4xf32>
    %49 = arith.addf %48, %45 : vector<8x4xf32>
    %c0_38 = arith.constant 0 : index
    %c4 = arith.constant 4 : index
    %50 = vector.load %arg15[%c0_38, %c4] : memref<8x8xf32, #tpu.memory_space<vmem>>, vector<8x4xf32>
    tpu.vector_store %arg15[%c0_38, %c4], %49 {strides = array<i32>} : memref<8x8xf32, #tpu.memory_space<vmem>>, vector<8x4xf32>,
    return
  }
  func.func @transform_0(%arg0: i32) -> (i32, i32) {
    %c0_i32 = arith.constant 0 : i32
    %c0_i32_0 = arith.constant 0 : i32
    return %arg0, %c0_i32 : i32, i32
  }
  func.func @transform_1(%arg0: i32) -> (i32, i32) {
    %c0_i32 = arith.constant 0 : i32
    %c0_i32_0 = arith.constant 0 : i32
    %c0_i32_1 = arith.constant 0 : i32
    return %c0_i32, %c0_i32_0 : i32, i32
  }
  func.func @transform_2(%arg0: i32) -> (i32, i32) {
    %c0_i32 = arith.constant 0 : i32
    %c0_i32_0 = arith.constant 0 : i32
    %c0_i32_1 = arith.constant 0 : i32
    return %c0_i32, %c0_i32_0 : i32, i32
  }
  func.func @transform_3(%arg0: i32) -> (i32, i32) {
    %c0_i32 = arith.constant 0 : i32
    %c0_i32_0 = arith.constant 0 : i32
    %c0_i32_1 = arith.constant 0 : i32
    return %c0_i32, %c0_i32_0 : i32, i32
  }
  func.func @transform_4(%arg0: i32) -> (i32, i32) {
    %c0_i32 = arith.constant 0 : i32
    %c0_i32_0 = arith.constant 0 : i32
    %c0_i32_1 = arith.constant 0 : i32
    return %c0_i32, %c0_i32_0 : i32, i32
  }
  func.func @transform_5(%arg0: i32) -> (i32, i32) {
    %c0_i32 = arith.constant 0 : i32
    %c0_i32_0 = arith.constant 0 : i32
    %c0_i32_1 = arith.constant 0 : i32
    return %c0_i32, %c0_i32_0 : i32, i32
  }
  func.func @transform_6(%arg0: i32) -> (i32, i32) {
    %c0_i32 = arith.constant 0 : i32
    %c0_i32_0 = arith.constant 0 : i32
    %c0_i32_1 = arith.constant 0 : i32
    return %c0_i32, %c0_i32_0 : i32, i32
  }
  func.func @transform_7(%arg0: i32) -> (i32, i32) {
    %c0_i32 = arith.constant 0 : i32
    %c0_i32_0 = arith.constant 0 : i32
    %c0_i32_1 = arith.constant 0 : i32
    return %c0_i32, %c0_i32_0 : i32, i32
  }
  func.func @transform_8(%arg0: i32) -> (i32, i32) {
    %c0_i32 = arith.constant 0 : i32
    %c0_i32_0 = arith.constant 0 : i32
    %c0_i32_1 = arith.constant 0 : i32
    return %c0_i32, %c0_i32_0 : i32, i32
  }
  func.func @transform_9(%arg0: i32) -> (i32, i32) {
    %c0_i32 = arith.constant 0 : i32
    %c0_i32_0 = arith.constant 0 : i32
    %c0_i32_1 = arith.constant 0 : i32
    return %c0_i32, %c0_i32_0 : i32, i32
  }
  func.func @transform_10(%arg0: i32) -> (i32, i32) {
    %c0_i32 = arith.constant 0 : i32
    %c0_i32_0 = arith.constant 0 : i32
    %c0_i32_1 = arith.constant 0 : i32
    return %c0_i32, %c0_i32_0 : i32, i32
  }
  func.func @transform_11(%arg0: i32) -> (i32, i32) {
    %c0_i32 = arith.constant 0 : i32
    %c0_i32_0 = arith.constant 0 : i32
    %c0_i32_1 = arith.constant 0 : i32
    return %c0_i32, %c0_i32_0 : i32, i32
  }
  func.func @transform_12(%arg0: i32) -> (i32, i32) {
    %c0_i32 = arith.constant 0 : i32
    %c0_i32_0 = arith.constant 0 : i32
    %c0_i32_1 = arith.constant 0 : i32
    return %c0_i32, %c0_i32_0 : i32, i32
  }
  func.func @transform_13(%arg0: i32) -> (i32, i32) {
    %c0_i32 = arith.constant 0 : i32
    %c0_i32_0 = arith.constant 0 : i32
    %c0_i32_1 = arith.constant 0 : i32
    return %c0_i32, %c0_i32_0 : i32, i32
  }
  func.func @transform_14(%arg0: i32) -> (i32, i32) {
    %c0_i32 = arith.constant 0 : i32
    %c0_i32_0 = arith.constant 0 : i32
    return %arg0, %c0_i32 : i32, i32
  }
}

</mosaic_0001>

<bundles_post_ra>
// kernel: tpu_custom_call.1
= control target key start
LH: loop header
LB: loop body
LE: loop exit
PB: predicated region body
PF: predicated region fallthrough
CT: control target
= control target key end

     0   :  { %19 = vsyncpa [#allocation3], 0  ;;  %s812_s0 = inlined_call_operand.vmem [shape: f32[8,8], index: 0, kind: input, shape index: {}]   ;;  %s813_s1 = inlined_call_operand.hbm [shape: f32[4,32], index: 1, kind: input, shape index: {}]   ;;  %s814_s2 = inlined_call_operand.hbm [shape: f32[1,32], index: 2, kind: input, shape index: {}]   ;;  %s815_s3 = inlined_call_operand.vmem [shape: f32[32,32], index: 3, kind: input, shape index: {}]   ;;  %s816_s4 = inlined_call_operand.hbm [shape: f32[1,32], index: 4, kind: input, shape index: {}]   ;;  %s817_s5 = inlined_call_operand.hbm [shape: f32[1,32], index: 5, kind: input, shape index: {}]   ;;  %s818_s6 = inlined_call_operand.vmem [shape: f32[32,4], index: 6, kind: input, shape index: {}]   ;;  %s819_s7 = inlined_call_operand.vmem [shape: f32[32,32], index: 7, kind: input, shape index: {}]   ;;  %s820_s8 = inlined_call_operand.hbm [shape: f32[8,32], index: 8, kind: input, shape index: {}]   ;;  %s821_s9 = inlined_call_operand.hbm [shape: f32[1,32], index: 9, kind: input, shape index: {}]   ;;  %s822_s10 = inlined_call_operand.hbm [shape: f32[32,32], index: 10, kind: input, shape index: {}]   ;;  %s823_s11 = inlined_call_operand.vmem [shape: f32[1,32], index: 11, kind: input, shape index: {}]   ;;  %s824_s12 = inlined_call_operand.vmem [shape: f32[32,4], index: 12, kind: input, shape index: {}]   ;;  %s825_s13 = inlined_call_operand.vmem [shape: f32[1,4], index: 13, kind: input, shape index: {}]   ;;  %s826_s14 = inlined_call_operand.hbm [shape: f32[8,8], index: 14, kind: output, shape index: {}]  }
   0x1   :  { %20 = vsyncpa [#allocation6], 0 }
   0x2   :  { %21 = vsyncpa [#allocation9], 0 }
   0x3   :  { %22 = vsyncpa [#allocation12], 0  ;;  %s42_s15 = sshll.u32 %s814_s2, 4  ;;  %s43_s15 = int_to_ptr.hbm [resolvable:$true] %s42_s15 }
   0x4   :  { %23 = vsyncpa [#allocation4], 0  ;;  %s637_s16 = smov [#allocation5]   ;;  %s66_s20 = sshll.u32 %s817_s5, 4  ;;  %s67_s20 = int_to_ptr.hbm [resolvable:$true] %s66_s20 }
   0x5   :  { %s44_s17 = sshll.u32 %s637_s16, 4  ;;  %s638_s21 = smov [#allocation8]   ;;  %s45_s17 = int_to_ptr.vmem [resolvable:$true] %s44_s17 }
   0x6   :  { %47 = dma.hbm_to_vmem [thread:$0]  %s43_s15, 16, %s45_s17, [#allocation6]  }
   0x7   :  { %s68_s22 = sshll.u32 %s638_s21, 4  ;;  %s92_s25 = sshll.u32 %s821_s9, 4  ;;  %s69_s22 = int_to_ptr.vmem [resolvable:$true] %s68_s22  ;;  %s93_s25 = int_to_ptr.hbm [resolvable:$true] %s92_s25 }
   0x8   :  { %71 = dma.hbm_to_vmem [thread:$0]  %s67_s20, 16, %s69_s22, [#allocation9]  }
   0x9   :  { %s31_s27 = sshll.u32 %s813_s1, 4  ;;  %s639_s28 = smov [#allocation11]   ;;  %s32_s27 = int_to_ptr.hbm [resolvable:$true] %s31_s27 }
   0xa   :  { %s94_s29 = sshll.u32 %s639_s28, 4  ;;  %s640_s5 = smov [#allocation2]   ;;  %s95_s29 = int_to_ptr.vmem [resolvable:$true] %s94_s29 }
   0xb   :  { %97 = dma.hbm_to_vmem [thread:$0]  %s93_s25, 16, %s95_s29, [#allocation12]  }
   0xc   :  { %s33_s30 = sshll.u32 %s640_s5, 4  ;;  %s55_s17 = sshll.u32 %s816_s4, 4  ;;  %s34_s30 = int_to_ptr.vmem [resolvable:$true] %s33_s30  ;;  %s56_s17 = int_to_ptr.hbm [resolvable:$true] %s55_s17 }
   0xd   :  { %36 = dma.hbm_to_vmem [thread:$0]  %s32_s27, 64, %s34_s30, [#allocation3]  }
   0xe   :  { %s81_s19 = sshll.u32 %s820_s8, 4  ;;  %s641_s20 = smov [#allocation7]   ;;  %s82_s19 = int_to_ptr.hbm [resolvable:$true] %s81_s19 }
   0xf   :  { %s57_s1 = sshll.u32 %s641_s20, 4  ;;  %s642_s21 = smov [#allocation10]   ;;  %s58_s1 = int_to_ptr.vmem [resolvable:$true] %s57_s1 }
  0x10   :  { %60 = dma.hbm_to_vmem [thread:$0]  %s56_s17, 16, %s58_s1, [#allocation6]  }
  0x11   :  { %s83_s22 = sshll.u32 %s642_s21, 4  ;;  %s102_s25 = sshll.u32 %s822_s10, 4  ;;  %s84_s22 = int_to_ptr.vmem [resolvable:$true] %s83_s22  ;;  %s103_s25 = int_to_ptr.hbm [resolvable:$true] %s102_s25 }
  0x12   :  { %86 = dma.hbm_to_vmem [thread:$0]  %s82_s19, 128, %s84_s22, [#allocation9]  }
  0x13   :  { %s643_s4 = smov [#allocation13]   ;;  %s644_s26 = smov 128  }
  0x14   :  { %s104_s2 = sshll.u32 %s643_s4, 4  ;;  %s645_s27 = smov 8   ;;  %s105_s2 = int_to_ptr.vmem [resolvable:$true] %s104_s2 }
  0x15   :  { %110 = dma.hbm_to_vmem [thread:$0]  %s103_s25, 512, %s105_s2, [#allocation12], %s644_s26, %s644_s26, %s645_s27  }
  0x16   :  { %627 = dma.done.wait [#allocation3], 64  }
  0x17   :  { %628 = vsyncadd [#allocation3], 4294967232 }
  0x18   :  { %629 = dma.done.wait [#allocation6], 32  }
  0x19   :  { %630 = vsyncadd [#allocation6], 4294967264 }
  0x1a   :  { %631 = dma.done.wait [#allocation9], 144  }
  0x1b   :  { %632 = vsyncadd [#allocation9], 4294967152 }
  0x1c   :  { %633 = dma.done.wait [#allocation12], 528  }
  0x1d   :  { %634 = vsyncadd [#allocation12], 4294966768  ;;  %vm155_vm0 = vcmask 1043456   ;;  %vm151_vm1 = vcmask 31744   ;;  %v146_v0 = vld [vmem:[#allocation2] sm:$0xf] }
  0x1e   :  { %v145_v1 = vld [vmem:[%s812_s0] sm:$0xff]  ;;  %401 = vmatpush.msk.msra.mxu0 %vm155_vm0, %v146_v0  ;;  %v183_v2 = vld [vmem:[%s815_s3 + $0x18] sm:$0xff]  ;;  %v182_v3 = vld [vmem:[%s815_s3 + $0x10] sm:$0xff]  ;;  %vm282_vm2 = vcmask 64512   ;;  %vm188_vm3 = vcmask 261120   ;;  %s646_s23 = smov 124  }
  0x1f   :  { %402 = vmatmul.msk.f32.vlgmr.msra.gmra.mxu0 %vm151_vm1, %v145_v1  ;;  %204 = vmatpush.msra.mxu1 %v183_v2  ;;  %v277_v4 = vld [vmem:[#allocation10] sm:$0xff]  ;;  %v180_v6 = vld [vmem:[%s815_s3] sm:$0xff]  ;;  %v423_v11 = vld [vmem:[#allocation11] ss:$0 sm:$0xff]  ;;  %s388_s1 = sshll.u32 %s826_s14, 4  ;;  %vm379_vm4 = vcmask 64544   ;;  %s389_s1 = int_to_ptr.hbm [resolvable:$true] %s388_s1 }
  0x20   :  { %v181_v5 = vld [vmem:[%s815_s3 + $0x8] sm:$0xff]  ;;  %300 = vmatpush.msrb.mxu0 %v277_v4  ;;  %v421_v7 = vld [vmem:[#allocation5] ss:$0 sm:$0xff]  ;;  %v225_v15 = vld [vmem:[%s819_s7 + $0x18] sm:$0xff]  ;;  %369 = vrot.lane.b32.xlu0 %v145_v1, %s646_s23  ;;  %s648_s3 = smov [#allocation14]  }
  0x21   :  { %205 = vmatpush.msra.mxu1 %v182_v3  ;;  %v309_v14 = vld [vmem:[#allocation13 + $0x18] sm:$0xff]  ;;  %241 = vmatpush.msra.mxu2 %v225_v15  ;;  %v308_v16 = vld [vmem:[#allocation13 + $0x10] sm:$0xff]  ;;  %v307_v18 = vld [vmem:[#allocation13 + $0x8] sm:$0xff]  ;;  %s386_s18 = sshll.u32 %s648_s3, 4  ;;  %s387_s18 = int_to_ptr.vmem [resolvable:$true] %s386_s18 }
  0x22   :  { %v224_v17 = vld [vmem:[%s819_s7 + $0x10] sm:$0xff]  ;;  %v223_v19 = vld [vmem:[%s819_s7 + $0x8] sm:$0xff]  ;;  %v222_v21 = vld [vmem:[%s819_s7] sm:$0xff] }
  0x23   :  { %206 = vmatpush.msra.mxu1 %v181_v5  ;;  %242 = vmatpush.msra.mxu2 %v224_v17  ;;  %v306_v20 = vld [vmem:[#allocation13] sm:$0xff]  ;;  %v422_v23 = vld [vmem:[#allocation7] ss:$0 sm:$0xff]  ;;  %v424_v28 = vld [vmem:[#allocation8] ss:$0 sm:$0xff] }
  0x24   :  { %v341_v31 = vld [vmem:[%s824_s12 + $0x18] sm:$0xff]  ;;  %v340_v33 = vld [vmem:[%s824_s12 + $0x10] sm:$0xff]  ;;  %v339_v35 = vld [vmem:[%s824_s12 + $0x8] sm:$0xff] }
  0x25   :  { %207 = vmatpush.msra.mxu1 %v180_v6  ;;  %243 = vmatpush.msra.mxu2 %v223_v19  ;;  %v253_v32 = vld [vmem:[%s818_s6 + $0x18] sm:$0xff]  ;;  %v252_v34 = vld [vmem:[%s818_s6 + $0x10] sm:$0xff]  ;;  %v425_v36 = vld [vmem:[%s823_s11] ss:$0 sm:$0xff] }
  0x26   :  { %269 = vmatpush.msra.mxu3 %v253_v32  ;;  %v251_v39 = vld [vmem:[%s818_s6 + $0x8] sm:$0xff]  ;;  %v338_v40 = vld [vmem:[%s824_s12] sm:$0xff] }
  0x27   :  { %406 = vmatmul.msk.f32.vlgmr.msrb.gmra.mxu0 %vm282_vm2, %v145_v1  ;;  %329 = vmatpush.msrb.mxu1 %v309_v14  ;;  %v250_v41 = vld [vmem:[%s818_s6] sm:$0xff]  ;;  %s647_s6 = smov 4  }
  0x28   :  { %244 = vmatpush.msra.mxu2 %v222_v21  ;;  %270 = vmatpush.msra.mxu3 %v252_v34  ;;  %v426_v48 = vld [vmem:[%s825_s13] ss:$0 sm:$0xff] }
  0x29   :  { %330 = vmatpush.msrb.mxu1 %v308_v16 }
  0x2a   :  { %361 = vmatpush.msrb.mxu2 %v341_v31  ;;  %271 = vmatpush.msra.mxu3 %v251_v39 }
  0x2b   :  { %331 = vmatpush.msrb.mxu1 %v307_v18 }
  0x2c   :  { %362 = vmatpush.msrb.mxu2 %v340_v33  ;;  %272 = vmatpush.msra.mxu3 %v250_v41 }
  0x2d   :  { %332 = vmatpush.msrb.mxu1 %v306_v20 }
  0x2e   :  { %363 = vmatpush.msrb.mxu2 %v339_v35 }
  0x30   :  { %364 = vmatpush.msrb.mxu2 %v338_v40 }
  0x92   :  { %v370_v47 = vpop.permute.xlu0 %369 }
  0x93   :  { %372 = vst.msk [vmem:[#allocation14] sm:$0xff] %vm151_vm1, %v370_v47 }
  0x9c   :  { %v176_v8 = vpop.f32.mrf.mxu0 }
  0x9d   :  { %v177_v9 = vadd.f32 %v421_v7, %v176_v8 }
  0x9f   :  { %427 = vtanh.f32 %v177_v9 }
  0xa4   :  { %v302_v12 = vpop.f32.mrf.mxu0 }
  0xa5   :  { %v428_v10 = vpop.eup %427  ;;  %v303_v13 = vadd.f32 %v423_v11, %v302_v12 }
  0xa6   :  { %403 = vmatmul.msk.f32.vlgmr.msra.gmra.mxu1 %vm188_vm3, %v428_v10  ;;  %v220_v43 = vmul.f32 %v428_v10, %v428_v10 }
  0xa7   :  { %429 = vtanh.f32 %v303_v13 }
  0xa8   :  { %v221_v44 = vsub.f32 1.0, %v220_v43 }
  0xad   :  { %v430_v22 = vpop.eup %429 }
  0xae   :  { %407 = vmatmul.msk.f32.vlgmr.msrb.gmra.mxu1 %vm188_vm3, %v430_v22 }
 0x123   :  { %v209_v24 = vpop.f32.mrf.mxu1 }
 0x124   :  { %v210_v25 = vadd.f32 %v422_v23, %v209_v24 }
 0x126   :  { %431 = vtanh.f32 %v210_v25 }
 0x12b   :  { %v334_v37 = vpop.f32.mrf.mxu1 }
 0x12c   :  { %v432_v26 = vpop.eup %431  ;;  %v335_v38 = vadd.f32 %v425_v36, %v334_v37 }
 0x12d   :  { %v213_v27 = vmul.f32 %v432_v26, %v432_v26 }
 0x12e   :  { %433 = vtanh.f32 %v335_v38 }
 0x12f   :  { %v214_v29 = vsub.f32 1.0, %v213_v27 }
 0x131   :  { %v219_v30 = vmul.f32 %v424_v28, %v214_v29 }
 0x133   :  { %404 = vmatmul.msk.f32.vlgmr.msra.gmra.mxu2 %vm188_vm3, %v219_v30 }
 0x134   :  { %v434_v42 = vpop.eup %433 }
 0x13b   :  { %408 = vmatmul.msk.f32.vlgmr.msrb.gmra.mxu2 %vm188_vm3, %v434_v42 }
 0x1b6   :  { %v246_v45 = vpop.f32.mrf.mxu2 }
 0x1b7   :  { %v249_v46 = vmul.f32 %v246_v45, %v221_v44 }
 0x1b9   :  { %405 = vmatmul.msk.f32.vlgmr.msra.gmra.mxu3 %vm188_vm3, %v249_v46 }
 0x1be   :  { %v366_v49 = vpop.f32.mrf.mxu2 }
 0x1bf   :  { %v367_v50 = vadd.f32 %v426_v48, %v366_v49 }
 0x23c   :  { %v274_v51 = vpop.f32.mrf.mxu3 }
 0x23d   :  { %v373_v52 = vsub.f32 0.0, %v274_v51 }
 0x23f   :  { %v374_v53 = vadd.f32 %v373_v52, %v367_v50 }
 0x241   :  { %376 = vrot.lane.b32.xlu0 %v374_v53, %s647_s6 }
 0x2b3   :  { %v377_v54 = vpop.permute.xlu0 %376 }
 0x2b4   :  { %380 = vst.msk [vmem:[#allocation14] sm:$0xff] %vm379_vm4, %v377_v54 }
 0x2b5   :  { %391 = dma.vmem_to_hbm [thread:$0]  %s387_s18, 128, %s389_s1, [#allocation4]  }
 0x2b6   :  { %635 = dma.done.wait [#allocation4], 128  }
 0x2b7   :  { %636 = vsyncadd [#allocation4], 4294967168 }
 0x2b8   :  { %396 = vsyncpa [#allocation3], 1 }
 0x2b9   :  { %397 = vsyncpa [#allocation6], 1 }
 0x2ba   :  { %398 = vsyncpa [#allocation9], 1 }
 0x2bb   :  { %399 = vsyncpa [#allocation12], 1 }
 0x2bc   :  { %400 = vsyncpa [#allocation4], 1 }

</bundles_post_ra>
